<compile_context>
chip_gen: v5e
topology: v5e:2x2
jax: 0.10.0
libtpu: 0.0.40
codegen_flags: <defaults>
</compile_context>

<pallas_src>
import jax
import jax.numpy as jnp
import numpy as np
from jax.experimental import pallas as pl
from jax.experimental.pallas import tpu as pltpu

B = 8          # batch
H = 32         # rnn_size == hidden_size == input_encoding_size
L = 2          # num_layers
T = 8          # decode timesteps processed per kernel call
G = 5 * H      # (4 + use_maxout) * rnn_size


# --------------------------------------------------------------------------
# Host-side packing (done ONCE at model init, not per step)
# --------------------------------------------------------------------------
def _reorder_gate_cols(x):
    # [in | forget | out | max_a | max_b]  ->  [max_a | in | forget | out | max_b]
    return jnp.concatenate([x[..., 3 * H:4 * H], x[..., 0:3 * H], x[..., 4 * H:5 * H]],
                           axis=-1)


def pack_params(params):
    (w2h_w, w2h_b, v2h_w, v2h_b,
     i2h_w, i2h_b,
     h2h0_w, h2h0_b, h2h1_w, h2h1_b,
     r_i2h_w, r_i2h_b, r_h2h_w, r_h2h_b) = params
    rg = _reorder_gate_cols

    # layer 0: lhs = [xt | prev_h0]  (B, 2H)
    w0 = jnp.concatenate([rg(w2h_w), rg(h2h0_w)], axis=0).astype(jnp.bfloat16)      # (2H, G)
    # layer 1 + fake-region: lhs = [prev_h1 | h0_new]  (B, 2H)
    w1 = jnp.concatenate(
        [jnp.concatenate([rg(h2h1_w), r_h2h_w], axis=1),
         jnp.concatenate([rg(i2h_w), r_i2h_w], axis=1)], axis=0).astype(jnp.bfloat16)  # (2H, G+H)

    v2h_wp = rg(v2h_w).astype(jnp.float32)                                           # (H, G)
    b0_base = rg(w2h_b + v2h_b + h2h0_b).astype(jnp.float32)                         # (1, G)
    b1 = jnp.concatenate([rg(i2h_b + h2h1_b), r_i2h_b + r_h2h_b],
                         axis=1).astype(jnp.float32)                                 # (1, G+H)
    return w0, w1, v2h_wp, b0_base, b1


# --------------------------------------------------------------------------
# Kernel
# --------------------------------------------------------------------------
def _cell(sums, sig, prev_c):
    # column layout: [maxout_a | in | forget | out | maxout_b]
    in_gate = sig[:, H:2 * H]
    forget_gate = sig[:, 2 * H:3 * H]
    out_gate = sig[:, 3 * H:4 * H]
    in_transform = jnp.maximum(sums[:, 0:H], sums[:, 4 * H:5 * H])   # lane-aligned max
    next_c = forget_gate * prev_c + in_gate * in_transform
    tanh_c = jnp.tanh(next_c)
    return next_c, out_gate * tanh_c, tanh_c


def _adaatt_lstm_seq_kernel(
    x_ref,      # (1, B, H)   bf16 : xt for this timestep
    w0_ref,     # (2H, G)     bf16 : [w2h ; h2h0]           (resident)
    w1_ref,     # (2H, G+H)   bf16 : [[h2h1|r_h2h];[i2h|r_i2h]] (resident)
    b0_ref,     # (B, G)      f32  : w2h_b+v2h_b+h2h0_b + img_fc@v2h (resident)
    b1_ref,     # (1, G+H)    f32  : [i2h_b+h2h1_b | r_i2h_b+r_h2h_b] (resident)
    hc0_ref,    # (B, 4H)     f32  : initial [h0|h1|c0|c1]  (resident)
    y_ref,      # (1, B, 2H)  f32  : per-step [top_h | fake]
    state_ref,  # (B, 4H)     f32  : carried [h0|h1|c0|c1]  (resident accumulator)
):
    t = pl.program_id(0)

    @pl.when(t == 0)
    def _init():
        state_ref[...] = hc0_ref[...]

    prev = state_ref[...]
    prev_h0 = prev[:, 0:H]
    prev_h1 = prev[:, H:2 * H]
    prev_c0 = prev[:, 2 * H:3 * H]
    prev_c1 = prev[:, 3 * H:4 * H]

    xt = x_ref[0]                                                # (B, H) bf16

    # ---------------- layer 0: one fused MXU dot (K = 2H) ----------------
    lhs0 = jnp.concatenate([xt, prev_h0.astype(jnp.bfloat16)], axis=1)
    sums0 = jnp.dot(lhs0, w0_ref[...],
                    preferred_element_type=jnp.float32) + b0_ref[...]
    sig0 = jax.nn.sigmoid(sums0)
    c0n, h0n, _ = _cell(sums0, sig0, prev_c0)

    # ------- layer 1 + fake region: one fused MXU dot (K = 2H, N = G+H) -------
    lhs1 = jnp.concatenate([prev_h1.astype(jnp.bfloat16), h0n.astype(jnp.bfloat16)],
                           axis=1)
    sums1 = jnp.dot(lhs1, w1_ref[...],
                    preferred_element_type=jnp.float32) + b1_ref[...]
    sig1 = jax.nn.sigmoid(sums1)                                 # also covers n5 cols
    c1n, h1n, tanh_c1 = _cell(sums1, sig1, prev_c1)
    fake = sig1[:, G:G + H] * tanh_c1

    # carry state (VMEM-resident; HBM writeback only after the last step)
    state_ref[...] = jnp.concatenate([h0n, h1n, c0n, c1n], axis=1)
    # stream per-step outputs
    y_ref[0] = jnp.concatenate([h1n, fake], axis=1)


# --------------------------------------------------------------------------
# Wrapper (jitted): whole decode sequence in one pallas_call
# --------------------------------------------------------------------------
def _run_pallas(xs_b, w0, w1, b0_eff, b1, hc0):
    n_steps = xs_b.shape[0]
    grid_spec = pltpu.PrefetchScalarGridSpec(
        num_scalar_prefetch=0,
        grid=(n_steps,),
        in_specs=[
            pl.BlockSpec((1, B, H), lambda t: (t, 0, 0)),        # xt per step
            pl.BlockSpec((2 * H, G), lambda t: (0, 0)),          # resident
            pl.BlockSpec((2 * H, G + H), lambda t: (0, 0)),      # resident
            pl.BlockSpec((B, G), lambda t: (0, 0)),              # resident
            pl.BlockSpec((1, G + H), lambda t: (0, 0)),          # resident
            pl.BlockSpec((B, 4 * H), lambda t: (0, 0)),          # resident
        ],
        out_specs=[
            pl.BlockSpec((1, B, 2 * H), lambda t: (t, 0, 0)),    # per-step [h1|fake]
            pl.BlockSpec((B, 4 * H), lambda t: (0, 0)),          # final state
        ],
    )
    return pl.pallas_call(
        _adaatt_lstm_seq_kernel,
        grid_spec=grid_spec,
        out_shape=[
            jax.ShapeDtypeStruct((n_steps, B, 2 * H), jnp.float32),
            jax.ShapeDtypeStruct((B, 4 * H), jnp.float32),
        ],
        compiler_params=pltpu.CompilerParams(
            dimension_semantics=("arbitrary",)),                 # recurrent time axis
    )(xs_b, w0, w1, b0_eff, b1, hc0)


@jax.jit
def adaatt_lstm_sequence(xs, img_fc, state, packed):
    """Run T decode steps. xs: (T,B,H), img_fc: (B,H) held constant across steps."""
    w0, w1, v2h_wp, b0_base, b1 = packed
    h, c = state
    # img_fc contribution is timestep-invariant -> fold into the layer-0 bias (f32)
    b0_eff = b0_base + img_fc.astype(jnp.float32) @ v2h_wp       # (B, G)
    hc0 = jnp.concatenate([h[0], h[1], c[0], c[1]], axis=1)      # (B, 4H) f32
    xs_b = xs.astype(jnp.bfloat16)

    y_seq, state_out = _run_pallas(xs_b, w0, w1, b0_eff, b1, hc0)

    top_h_seq = y_seq[:, :, 0:H]
    fake_seq = y_seq[:, :, H:2 * H]
    new_h = jnp.stack([state_out[:, 0:H], state_out[:, H:2 * H]])
    new_c = jnp.stack([state_out[:, 2 * H:3 * H], state_out[:, 3 * H:4 * H]])
    return top_h_seq, fake_seq, (new_h, new_c)


def adaatt_lstm_forward(xt, img_fc, state, packed):
    """Single-step convenience wrapper matching the torch module signature."""
    top, fake, new_state = adaatt_lstm_sequence(xt[None], img_fc, state, packed)
    return top[0], fake[0], new_state


# --------------------------------------------------------------------------
# Pure-JAX reference (original gate ordering, f32 throughout)
# --------------------------------------------------------------------------
def ref_forward(xt, img_fc, state, params):
    (w2h_w, w2h_b, v2h_w, v2h_b,
     i2h_w, i2h_b,
     h2h0_w, h2h0_b, h2h1_w, h2h1_b,
     r_i2h_w, r_i2h_b, r_h2h_w, r_h2h_b) = params
    h, c = state

    def cell(all_sums, prev_c):
        sig = jax.nn.sigmoid(all_sums[:, :3 * H])
        in_g, f_g, o_g = sig[:, :H], sig[:, H:2 * H], sig[:, 2 * H:3 * H]
        in_t = jnp.maximum(all_sums[:, 3 * H:4 * H], all_sums[:, 4 * H:5 * H])
        nc = f_g * prev_c + in_g * in_t
        tc = jnp.tanh(nc)
        return nc, o_g * tc, tc

    s0 = (xt @ w2h_w + w2h_b) + (img_fc @ v2h_w + v2h_b) + (h[0] @ h2h0_w + h2h0_b)
    c0n, h0n, _ = cell(s0, c[0])
    s1 = (h0n @ i2h_w + i2h_b) + (h[1] @ h2h1_w + h2h1_b)
    c1n, h1n, tc1 = cell(s1, c[1])
    n5 = (h0n @ r_i2h_w + r_i2h_b) + (h[1] @ r_h2h_w + r_h2h_b)
    fake = jax.nn.sigmoid(n5) * tc1
    return h1n, fake, (jnp.stack([h0n, h1n]), jnp.stack([c0n, c1n]))


def ref_sequence(xs, img_fc, state, params):
    def body(carry, xt):
        top, fake, new_state = ref_forward(xt, img_fc, carry, params)
        return new_state, (top, fake)
    final_state, (tops, fakes) = jax.lax.scan(body, state, xs)
    return tops, fakes, final_state


def make_params(key):
    keys = jax.random.split(key, 14)

    def w(k, shape, scale=0.1):
        return (scale * jax.random.normal(k, shape)).astype(jnp.float32)

    return (
        w(keys[0], (H, G)), w(keys[1], (1, G)),      # w2h
        w(keys[2], (H, G)), w(keys[3], (1, G)),      # v2h
        w(keys[4], (H, G)), w(keys[5], (1, G)),      # i2h[0]  (layer 1 input)
        w(keys[6], (H, G)), w(keys[7], (1, G)),      # h2h[0]
        w(keys[8], (H, G)), w(keys[9], (1, G)),      # h2h[1]
        w(keys[10], (H, H)), w(keys[11], (1, H)),    # r_i2h
        w(keys[12], (H, H)), w(keys[13], (1, H)),    # r_h2h
    )


if __name__ == "__main__":
    root = jax.random.PRNGKey(0)
    k_xs, k_img, k_h, k_c, k_p = jax.random.split(root, 5)

    xs = jax.random.normal(k_xs, (T, B, H), dtype=jnp.float32)       # decode inputs
    img_fc = jax.random.normal(k_img, (B, H), dtype=jnp.float32)     # constant per seq
    h0 = 0.1 * jax.random.normal(k_h, (L, B, H), dtype=jnp.float32)
    c0 = 0.1 * jax.random.normal(k_c, (L, B, H), dtype=jnp.float32)
    params = make_params(k_p)

    packed = pack_params(params)                                     # once, at init

    top_seq, fake_seq, (hs, cs) = adaatt_lstm_sequence(xs, img_fc, (h0, c0), packed)
    jax.block_until_ready((top_seq, fake_seq, hs, cs))

    r_top, r_fake, (r_hs, r_cs) = ref_sequence(xs, img_fc, (h0, c0), params)

    # bf16 matmul operands with f32 accumulation, recurrent over T=8 steps
    tol = dict(rtol=3e-2, atol=3e-2)
    np.testing.assert_allclose(np.asarray(top_seq), np.asarray(r_top), **tol)
    np.testing.assert_allclose(np.asarray(fake_seq), np.asarray(r_fake), **tol)
    np.testing.assert_allclose(np.asarray(hs), np.asarray(r_hs), **tol)
    np.testing.assert_allclose(np.asarray(cs), np.asarray(r_cs), **tol)

    print("KERNEL_OK")
</pallas_src>

<mosaic_0001>
module attributes {stable_mosaic.version = 11 : i64} {
  func.func @_adaatt_lstm_seq_kernel(%arg0: i32, %arg1: memref<1x8x32xbf16, #tpu.memory_space<vmem>>, %arg2: memref<64x160xbf16, #tpu.memory_space<vmem>>, %arg3: memref<64x192xbf16, #tpu.memory_space<vmem>>, %arg4: memref<8x160xf32, #tpu.memory_space<vmem>>, %arg5: memref<1x192xf32, #tpu.memory_space<vmem>>, %arg6: memref<8x128xf32, #tpu.memory_space<vmem>>, %arg7: memref<1x8x64xf32, #tpu.memory_space<vmem>>, %arg8: memref<8x128xf32, #tpu.memory_space<vmem>>) attributes {dimension_semantics = [#tpu.dimension_semantics<arbitrary>], iteration_bounds = array<i64: 8>, scalar_prefetch = 0 : i64, scratch_operands = 0 : i64, tpu.core_type = #tpu.core_type<tc>, window_params = [{transform_indices = @transform_0, window_bounds = array<i64: 1, 8, 32>}, {pipeline_mode = #tpu.pipeline_mode<synchronous>, transform_indices = @transform_1, window_bounds = array<i64: 64, 160>}, {pipeline_mode = #tpu.pipeline_mode<synchronous>, transform_indices = @transform_2, window_bounds = array<i64: 64, 192>}, {pipeline_mode = #tpu.pipeline_mode<synchronous>, transform_indices = @transform_3, window_bounds = array<i64: 8, 160>}, {pipeline_mode = #tpu.pipeline_mode<synchronous>, transform_indices = @transform_4, window_bounds = array<i64: 1, 192>}, {pipeline_mode = #tpu.pipeline_mode<synchronous>, transform_indices = @transform_5, window_bounds = array<i64: 8, 128>}, {transform_indices = @transform_6, window_bounds = array<i64: 1, 8, 64>}, {pipeline_mode = #tpu.pipeline_mode<synchronous>, transform_indices = @transform_7, window_bounds = array<i64: 8, 128>}]} {
    %c0_i32 = arith.constant 0 : i32
    %0 = arith.cmpi eq, %arg0, %c0_i32 : i32
    %1 = arith.extui %0 : i1 to i32
    %c0_i32_0 = arith.constant 0 : i32
    %2 = arith.cmpi ne, %1, %c0_i32_0 : i32
    scf.if %2 {
      %c0_21 = arith.constant 0 : index
      %c0_22 = arith.constant 0 : index
      %64 = vector.load %arg6[%c0_21, %c0_22] : memref<8x128xf32, #tpu.memory_space<vmem>>, vector<8x128xf32>
      %c0_23 = arith.constant 0 : index
      %c0_24 = arith.constant 0 : index
      %65 = vector.load %arg8[%c0_23, %c0_24] : memref<8x128xf32, #tpu.memory_space<vmem>>, vector<8x128xf32>
      tpu.vector_store %arg8[%c0_23, %c0_24], %64 {strides = array<i32>} : memref<8x128xf32, #tpu.memory_space<vmem>>, vector<8x128xf32>,
    } else {
    }
    %c0 = arith.constant 0 : index
    %c0_1 = arith.constant 0 : index
    %3 = vector.load %arg8[%c0, %c0_1] : memref<8x128xf32, #tpu.memory_space<vmem>>, vector<8x128xf32>
    %4 = vector.extract_strided_slice %3 {offsets = [0, 0], sizes = [8, 32], strides = [1, 1]} : vector<8x128xf32> to vector<8x32xf32>
    %5 = vector.extract_strided_slice %3 {offsets = [0, 32], sizes = [8, 32], strides = [1, 1]} : vector<8x128xf32> to vector<8x32xf32>
    %6 = vector.extract_strided_slice %3 {offsets = [0, 64], sizes = [8, 32], strides = [1, 1]} : vector<8x128xf32> to vector<8x32xf32>
    %7 = vector.extract_strided_slice %3 {offsets = [0, 96], sizes = [8, 32], strides = [1, 1]} : vector<8x128xf32> to vector<8x32xf32>
    %c0_2 = arith.constant 0 : index
    %c0_3 = arith.constant 0 : index
    %c0_4 = arith.constant 0 : index
    %8 = vector.load %arg1[%c0_2, %c0_3, %c0_4] : memref<1x8x32xbf16, #tpu.memory_space<vmem>>, vector<1x8x32xbf16>
    %9 = vector.shape_cast %8 : vector<1x8x32xbf16> to vector<8x32xbf16>
    %10 = arith.truncf %4 : vector<8x32xf32> to vector<8x32xbf16>
    %11 = tpu.concatenate %9, %10 in 1 : vector<8x32xbf16>, vector<8x32xbf16> -> vector<8x64xbf16>
    %c0_5 = arith.constant 0 : index
    %c0_6 = arith.constant 0 : index
    %12 = vector.load %arg2[%c0_5, %c0_6] : memref<64x160xbf16, #tpu.memory_space<vmem>>, vector<64x160xbf16>
    %cst = arith.constant dense<0.000000e+00> : vector<8x160xf32>
    %13 = tpu.matmul %11, %12, %cst {dimension_numbers = #tpu.dot_dimension_numbers<[1], [0], [0], [1], [0, 0, 1, 1], [], []>} : vector<8x64xbf16>, vector<64x160xbf16>, vector<8x160xf32> -> vector<8x160xf32>
    %c0_7 = arith.constant 0 : index
    %c0_8 = arith.constant 0 : index
    %14 = vector.load %arg4[%c0_7, %c0_8] : memref<8x160xf32, #tpu.memory_space<vmem>>, vector<8x160xf32>
    %15 = arith.addf %13, %14 : vector<8x160xf32>
    %16 = arith.negf %15 : vector<8x160xf32>
    %17 = math.exp %16 : vector<8x160xf32>
    %cst_9 = arith.constant 1.000000e+00 : f32
    %18 = vector.broadcast %cst_9 : f32 to vector<8x160xf32>
    %19 = arith.addf %18, %17 : vector<8x160xf32>
    %20 = arith.divf %18, %19 : vector<8x160xf32>
    %21 = vector.extract_strided_slice %20 {offsets = [0, 32], sizes = [8, 32], strides = [1, 1]} : vector<8x160xf32> to vector<8x32xf32>
    %22 = vector.extract_strided_slice %20 {offsets = [0, 64], sizes = [8, 32], strides = [1, 1]} : vector<8x160xf32> to vector<8x32xf32>
    %23 = vector.extract_strided_slice %20 {offsets = [0, 96], sizes = [8, 32], strides = [1, 1]} : vector<8x160xf32> to vector<8x32xf32>
    %24 = vector.extract_strided_slice %15 {offsets = [0, 0], sizes = [8, 32], strides = [1, 1]} : vector<8x160xf32> to vector<8x32xf32>
    %25 = vector.extract_strided_slice %15 {offsets = [0, 128], sizes = [8, 32], strides = [1, 1]} : vector<8x160xf32> to vector<8x32xf32>
    %26 = arith.maximumf %24, %25 : vector<8x32xf32>
    %27 = arith.mulf %22, %6 : vector<8x32xf32>
    %28 = arith.mulf %21, %26 : vector<8x32xf32>
    %29 = arith.addf %27, %28 : vector<8x32xf32>
    %30 = math.tanh %29 : vector<8x32xf32>
    %31 = arith.mulf %23, %30 : vector<8x32xf32>
    %32 = arith.truncf %5 : vector<8x32xf32> to vector<8x32xbf16>
    %33 = arith.truncf %31 : vector<8x32xf32> to vector<8x32xbf16>
    %34 = tpu.concatenate %32, %33 in 1 : vector<8x32xbf16>, vector<8x32xbf16> -> vector<8x64xbf16>
    %c0_10 = arith.constant 0 : index
    %c0_11 = arith.constant 0 : index
    %35 = vector.load %arg3[%c0_10, %c0_11] : memref<64x192xbf16, #tpu.memory_space<vmem>>, vector<64x192xbf16>
    %cst_12 = arith.constant dense<0.000000e+00> : vector<8x192xf32>
    %36 = tpu.matmul %34, %35, %cst_12 {dimension_numbers = #tpu.dot_dimension_numbers<[1], [0], [0], [1], [0, 0, 1, 1], [], []>} : vector<8x64xbf16>, vector<64x192xbf16>, vector<8x192xf32> -> vector<8x192xf32>
    %c0_13 = arith.constant 0 : index
    %c0_14 = arith.constant 0 : index
    %37 = vector.load %arg5[%c0_13, %c0_14] : memref<1x192xf32, #tpu.memory_space<vmem>>, vector<1x192xf32>
    %38 = vector.broadcast %37 : vector<1x192xf32> to vector<8x192xf32>
    %39 = arith.addf %36, %38 : vector<8x192xf32>
    %40 = arith.negf %39 : vector<8x192xf32>
    %41 = math.exp %40 : vector<8x192xf32>
    %cst_15 = arith.constant 1.000000e+00 : f32
    %42 = vector.broadcast %cst_15 : f32 to vector<8x192xf32>
    %43 = arith.addf %42, %41 : vector<8x192xf32>
    %44 = arith.divf %42, %43 : vector<8x192xf32>
    %45 = vector.extract_strided_slice %44 {offsets = [0, 32], sizes = [8, 32], strides = [1, 1]} : vector<8x192xf32> to vector<8x32xf32>
    %46 = vector.extract_strided_slice %44 {offsets = [0, 64], sizes = [8, 32], strides = [1, 1]} : vector<8x192xf32> to vector<8x32xf32>
    %47 = vector.extract_strided_slice %44 {offsets = [0, 96], sizes = [8, 32], strides = [1, 1]} : vector<8x192xf32> to vector<8x32xf32>
    %48 = vector.extract_strided_slice %39 {offsets = [0, 0], sizes = [8, 32], strides = [1, 1]} : vector<8x192xf32> to vector<8x32xf32>
    %49 = vector.extract_strided_slice %39 {offsets = [0, 128], sizes = [8, 32], strides = [1, 1]} : vector<8x192xf32> to vector<8x32xf32>
    %50 = arith.maximumf %48, %49 : vector<8x32xf32>
    %51 = arith.mulf %46, %7 : vector<8x32xf32>
    %52 = arith.mulf %45, %50 : vector<8x32xf32>
    %53 = arith.addf %51, %52 : vector<8x32xf32>
    %54 = math.tanh %53 : vector<8x32xf32>
    %55 = arith.mulf %47, %54 : vector<8x32xf32>
    %56 = vector.extract_strided_slice %44 {offsets = [0, 160], sizes = [8, 32], strides = [1, 1]} : vector<8x192xf32> to vector<8x32xf32>
    %57 = arith.mulf %56, %54 : vector<8x32xf32>
    %58 = tpu.concatenate %31, %55, %29, %53 in 1 : vector<8x32xf32>, vector<8x32xf32>, vector<8x32xf32>, vector<8x32xf32> -> vector<8x128xf32>
    %c0_16 = arith.constant 0 : index
    %c0_17 = arith.constant 0 : index
    %59 = vector.load %arg8[%c0_16, %c0_17] : memref<8x128xf32, #tpu.memory_space<vmem>>, vector<8x128xf32>
    tpu.vector_store %arg8[%c0_16, %c0_17], %58 {strides = array<i32>} : memref<8x128xf32, #tpu.memory_space<vmem>>, vector<8x128xf32>,
    %60 = tpu.concatenate %55, %57 in 1 : vector<8x32xf32>, vector<8x32xf32> -> vector<8x64xf32>
    %c0_18 = arith.constant 0 : index
    %c0_19 = arith.constant 0 : index
    %c0_20 = arith.constant 0 : index
    %61 = vector.load %arg7[%c0_18, %c0_19, %c0_20] : memref<1x8x64xf32, #tpu.memory_space<vmem>>, vector<1x8x64xf32>
    %62 = vector.shape_cast %61 : vector<1x8x64xf32> to vector<8x64xf32>
    %63 = vector.shape_cast %60 : vector<8x64xf32> to vector<1x8x64xf32>
    tpu.vector_store %arg7[%c0_18, %c0_19, %c0_20], %63 {strides = array<i32>} : memref<1x8x64xf32, #tpu.memory_space<vmem>>, vector<1x8x64xf32>,
    return
  }
  func.func @transform_0(%arg0: i32) -> (i32, i32, i32) {
    %c0_i32 = arith.constant 0 : i32
    %c0_i32_0 = arith.constant 0 : i32
    %c0_i32_1 = arith.constant 0 : i32
    return %arg0, %c0_i32, %c0_i32_0 : i32, i32, i32
  }
  func.func @transform_1(%arg0: i32) -> (i32, i32) {
    %c0_i32 = arith.constant 0 : i32
    %c0_i32_0 = arith.constant 0 : i32
    %c0_i32_1 = arith.constant 0 : i32
    return %c0_i32, %c0_i32_0 : i32, i32
  }
  func.func @transform_2(%arg0: i32) -> (i32, i32) {
    %c0_i32 = arith.constant 0 : i32
    %c0_i32_0 = arith.constant 0 : i32
    %c0_i32_1 = arith.constant 0 : i32
    return %c0_i32, %c0_i32_0 : i32, i32
  }
  func.func @transform_3(%arg0: i32) -> (i32, i32) {
    %c0_i32 = arith.constant 0 : i32
    %c0_i32_0 = arith.constant 0 : i32
    %c0_i32_1 = arith.constant 0 : i32
    return %c0_i32, %c0_i32_0 : i32, i32
  }
  func.func @transform_4(%arg0: i32) -> (i32, i32) {
    %c0_i32 = arith.constant 0 : i32
    %c0_i32_0 = arith.constant 0 : i32
    %c0_i32_1 = arith.constant 0 : i32
    return %c0_i32, %c0_i32_0 : i32, i32
  }
  func.func @transform_5(%arg0: i32) -> (i32, i32) {
    %c0_i32 = arith.constant 0 : i32
    %c0_i32_0 = arith.constant 0 : i32
    %c0_i32_1 = arith.constant 0 : i32
    return %c0_i32, %c0_i32_0 : i32, i32
  }
  func.func @transform_6(%arg0: i32) -> (i32, i32, i32) {
    %c0_i32 = arith.constant 0 : i32
    %c0_i32_0 = arith.constant 0 : i32
    %c0_i32_1 = arith.constant 0 : i32
    return %arg0, %c0_i32, %c0_i32_0 : i32, i32, i32
  }
  func.func @transform_7(%arg0: i32) -> (i32, i32) {
    %c0_i32 = arith.constant 0 : i32
    %c0_i32_0 = arith.constant 0 : i32
    %c0_i32_1 = arith.constant 0 : i32
    return %c0_i32, %c0_i32_0 : i32, i32
  }
}

</mosaic_0001>

<bundles_post_ra>
// kernel: adaatt_lstm_sequence.1
= control target key start
LH: loop header
LB: loop body
LE: loop exit
PB: predicated region body
PF: predicated region fallthrough
CT: control target
= control target key end

     0   :  { %s820_s24 = smov 0   ;;  %s995_s0 = inlined_call_operand.vmem [shape: bf16[8,8,32], index: 0, kind: input, shape index: {}]   ;;  %s996_s1 = inlined_call_operand.vmem [shape: bf16[64,160], index: 1, kind: input, shape index: {}]   ;;  %s997_s2 = inlined_call_operand.vmem [shape: bf16[64,192], index: 2, kind: input, shape index: {}]   ;;  %s998_s3 = inlined_call_operand.vmem [shape: f32[8,160], index: 3, kind: input, shape index: {}]   ;;  %s999_s4 = inlined_call_operand.vmem [shape: f32[1,192], index: 4, kind: input, shape index: {}]   ;;  %s1000_s5 = inlined_call_operand.vmem [shape: f32[8,128], index: 5, kind: input, shape index: {}]   ;;  %s1001_s6 = inlined_call_operand.vmem [shape: f32[8,8,64], index: 6, kind: output, shape index: {0}]   ;;  %s1002_s7 = inlined_call_operand.vmem [shape: f32[8,128], index: 7, kind: output, shape index: {1}]  }
   0x1 LB: > { %s645_s25 = sadd.s32 4294967295, %s775_s24   ;;  %p649_p0 = scmp.ge.s32.totalorder %s775_s24, 1  ;;  %s775_s24 = sphi %s820_s24, %s18_s24  }
   0x2   : > { %p234_p1 = scmp.lt.s32.totalorder %s775_s24, 9 }
   0x4   : > { %p235_p2 = pnand %p649_p0, %p234_p1 }
   0x5   : > { %p264_p3 = scmp.lt.s32.totalorder (!%p235_p2), %s645_s25, 7  ;;  %p652_p4 = scmp.ne.s32.totalorder (!%p235_p2), %s645_s25, 0 }
   0x6   : > { %238 = sbr.rel (%p235_p2) target bundleno = 1323 (0x52b), region = 44 }
   0xb   : > { %s265_s26 = scalar_select %p264_p3, %s645_s25, 7 }
   0xc   : > { %276 = sbr.rel (%p652_p4) target bundleno = 19 (0x13), region = 48 }
   0xd   : > { %s650_s27 = sshll.u32 %s265_s26, 2  ;;  %s651_s28 = sshll.u32 %s265_s26, 3 }
   0xe   : > { %s831_s8 = scalar_lea.vmem %s995_s0, %s650_s27  ;;  %s836_s11 = scalar_lea.vmem %s1001_s6, %s651_s28 }
  0x11   : > { %v277_v0 = vld [vmem:[%s1000_s5] sm:$0xff] }
  0x12   : > { %278 = vst [vmem:[%s1002_s7] sm:$0xff] %v277_v0 }
  0x13 PF: > { %v679_v2 = vld [vmem:[%s996_s1 + $0x30] sm:$0xf]  ;;  %v733_v3 = vld [vmem:[%s996_s1 + $0x34] sm:$0xf0]  ;;  %v732_v6 = vld [vmem:[%s996_s1 + $0x34] sm:$0xf] }
  0x14   : > { %v680_v5 = vor.u32 %v733_v3, %v679_v2  ;;  %v681_v7 = vld [vmem:[%s996_s1 + $0x38] sm:$0xf0]  ;;  %v671_v8 = vld [vmem:[%s996_s1 + $0x20] sm:$0xf]  ;;  %v731_v10 = vld [vmem:[%s996_s1 + $0x24] sm:$0xf0] }
  0x15   : > { %v684_v9 = vor.u32 %v732_v6, %v681_v7  ;;  %v730_v11 = vld [vmem:[%s996_s1 + $0x24] sm:$0xf]  ;;  %v673_v12 = vld [vmem:[%s996_s1 + $0x28] sm:$0xf0]  ;;  %v672_v14 = vor.u32 %v731_v10, %v671_v8  ;;  %v663_v16 = vld [vmem:[%s996_s1 + $0x10] sm:$0xf] }
  0x16   : > { %348 = vmatpush.bf16.msra.mxu0 %v680_v5  ;;  %v676_v15 = vor.u32 %v730_v11, %v673_v12  ;;  %v729_v17 = vld [vmem:[%s996_s1 + $0x14] sm:$0xf0]  ;;  %v728_v19 = vld [vmem:[%s996_s1 + $0x14] sm:$0xf]  ;;  %v665_v20 = vld [vmem:[%s996_s1 + $0x18] sm:$0xf0] }
  0x17   : > { %361 = vmatpush.bf16.msra.mxu1 %v684_v9  ;;  %s777_s22 = smov 32   ;;  %v664_v21 = vor.u32 %v729_v17, %v663_v16  ;;  %v668_v22 = vor.u32 %v728_v19, %v665_v20  ;;  %v655_v23 = vld [vmem:[%s996_s1] sm:$0xf]  ;;  %v727_v24 = vld [vmem:[%s996_s1 + $0x4] sm:$0xf0]  ;;  %vm287_vm0 = vcmask 261120  }
  0x18   : > { %v726_v25 = vld [vmem:[%s996_s1 + $0x4] sm:$0xf]  ;;  %v657_v26 = vld [vmem:[%s996_s1 + $0x8] sm:$0xf0]  ;;  %v656_v27 = vor.u32 %v727_v24, %v655_v23  ;;  %v280_v29 = vld [vmem:[%s831_s8] sm:$0xf] }
  0x19   : > { %v847_v1 = vld [vmem:[%s1002_s7] sm:$0xff]  ;;  %v660_v28 = vor.u32 %v726_v25, %v657_v26  ;;  %vm341_vm1 = vcmask 523264   ;;  %v300_v33 = vld [vmem:[%s998_s3 + $0x8] sm:$0xff]  ;;  %s778_s8 = smov 96   ;;  %v714_v60 = vld [vmem:[%s997_s2 + $0x30] sm:$0xf] }
  0x1a   : > { %v281_v4 = vpack.c.bf16 %v847_v1, %v847_v1  ;;  %349 = vmatpush.bf16.msra.mxu0 %v672_v14  ;;  %v299_v32 = vld [vmem:[%s998_s3] sm:$0xff]  ;;  %v741_v61 = vld [vmem:[%s997_s2 + $0x34] sm:$0xf0]  ;;  %v740_v62 = vld [vmem:[%s997_s2 + $0x34] sm:$0xf]  ;;  %s779_s30 = smov 64  }
  0x1b   : > { %362 = vmatpush.bf16.msra.mxu1 %v676_v15  ;;  %v715_v63 = vor.u32 %v741_v61, %v714_v60  ;;  %v716_v0 = vld [vmem:[%s997_s2 + $0x38] sm:$0xf0]  ;;  %v739_v2 = vld [vmem:[%s997_s2 + $0x24] sm:$0xf0]  ;;  %v708_v5 = vld [vmem:[%s997_s2 + $0x28] sm:$0xf0] }
  0x1c   : > { %v283_v13 = vunpack.c.l.b16 %v281_v4  ;;  %v719_v3 = vor.u32 %v740_v62, %v716_v0  ;;  %v738_v4 = vld [vmem:[%s997_s2 + $0x24] sm:$0xf]  ;;  %v698_v8 = vld [vmem:[%s997_s2 + $0x10] sm:$0xf]  ;;  %v737_v9 = vld [vmem:[%s997_s2 + $0x14] sm:$0xf0] }
  0x1d   : > { %478 = vmatpush.bf16.msra.mxu2 %v715_v63  ;;  %v711_v7 = vor.u32 %v738_v4, %v708_v5  ;;  %v736_v10 = vld [vmem:[%s997_s2 + $0x14] sm:$0xf]  ;;  %v700_v11 = vld [vmem:[%s997_s2 + $0x18] sm:$0xf0]  ;;  %v699_v12 = vor.u32 %v737_v9, %v698_v8  ;;  %v690_v14 = vld [vmem:[%s997_s2] sm:$0xf] }
  0x1e   : > { %v284_v18 = vpack.c.b16 %v283_v13, %v283_v13  ;;  %350 = vmatpush.bf16.msra.mxu0 %v664_v21  ;;  %491 = vmatpush.bf16.msra.mxu3 %v719_v3  ;;  %v703_v13 = vor.u32 %v736_v10, %v700_v11  ;;  %v735_v15 = vld [vmem:[%s997_s2 + $0x4] sm:$0xf0]  ;;  %v734_v16 = vld [vmem:[%s997_s2 + $0x4] sm:$0xf]  ;;  %v692_v17 = vld [vmem:[%s997_s2 + $0x8] sm:$0xf0] }
  0x1f   : > { %363 = vmatpush.bf16.msra.mxu1 %v668_v22  ;;  %v695_v19 = vor.u32 %v734_v16, %v692_v17  ;;  %vm578_vm14 = vcmask 785408  }
  0x20   : > { %285 = vrot.lane.b32.xlu0 %v284_v18, %s777_s22  ;;  %408 = vrot.lane.b32.xlu2 %v284_v18, %s778_s8  ;;  %v691_v18 = vor.u32 %v735_v15, %v690_v14 }
  0x22   : > { %351 = vmatpush.bf16.msra.mxu0 %v656_v27  ;;  %492 = vmatpush.bf16.msra.mxu3 %v711_v7 }
  0x23   : > { %364 = vmatpush.bf16.msra.mxu1 %v660_v28  ;;  %v426_v28 = vld [vmem:[%s999_s4] sm:$0x3] }
  0x26   : > { %493 = vmatpush.bf16.msra.mxu3 %v703_v13 }
  0x2a   : > { %494 = vmatpush.bf16.msra.mxu3 %v695_v19 }
  0x7a   : > { %v409_v25 = vpop.permute.xlu2 %408 }
  0x92   : > { %v286_v30 = vpop.permute.xlu0 %285 }
  0x93   : > { %v290_v31 = vsel %vm287_vm0, %v280_v29, %v286_v30  ;;  %v428_v29 = vperm.slane %v426_v28, 0  ;;  %v429_v30 = vperm.slane %v426_v28, 1 }
  0x94   : > { %685 = vmatmul.msk.bf16.vlgmr.msra.gmra.mxu0 %vm341_vm1, %v290_v31  ;;  %686 = vmatmul.msk.bf16.vlgmr.msra.gmra.mxu1 %vm341_vm1, %v290_v31 }
 0x111   : > { %v353_v34 = vpop.f32.mrf.mxu0  ;;  %v366_v35 = vpop.f32.mrf.mxu1 }
 0x112   : > { %v354_v36 = vadd.f32 %v353_v34, %v299_v32  ;;  %v367_v37 = vadd.f32 %v366_v35, %v300_v33 }
 0x114   : > { %v389_v38 = vmax.f32 %v354_v36, %v367_v37  ;;  %v687_v41 = vmul.f32 -1.442695, %v354_v36 }
 0x116   : > { %392 = vrot.lane.b32.xlu0 %v389_v38, %s777_s22  ;;  %753 = vpow2.f32 %v687_v41 }
 0x119   : > { %v355_v39 = vpop.f32.mrf.mxu0  ;;  %v368_v40 = vpop.f32.mrf.mxu1 }
 0x11c   : > { %v754_v42 = vpop.eup %753 }
 0x11d   : > { %v373_v43 = vadd.f32 1.0, %v754_v42 }
 0x11f   : > { %755 = vrcp.f32 %v373_v43  ;;  %v385_v49 = vand.u32 2147483648, %v373_v43  ;;  %vm379_vm3 = vweird.f32 %v373_v43  ;;  %v383_v50 = vand.u32 2147483647, %v373_v43 }
 0x121   : > { %v386_v52 = vor.u32 1.1754944e-38, %v385_v49  ;;  %vm384_vm5 = vcmp.eq.f32.partialorder %v383_v50, 8.507059e+37 }
 0x125   : > { %v756_v44 = vpop.eup %755 }
 0x126   : > { %v375_v45 = vmul.f32 %v756_v44, %v373_v43  ;;  %vm380_vm2 = vweird.f32 %v756_v44 }
 0x127   : > { %vm381_vm4 = vmor %vm379_vm3, %vm380_vm2 }
 0x128   : > { %v376_v46 = vsub.f32 1.0, %v375_v45 }
 0x12a   : > { %v377_v47 = vmul.f32 %v756_v44, %v376_v46 }
 0x12c   : > { %v378_v48 = vadd.f32 %v756_v44, %v377_v47 }
 0x12e   : > { %v382_v51 = vsel %vm381_vm4, %v756_v44, %v378_v48 }
 0x12f   : > { %v387_v54 = vsel %vm384_vm5, %v386_v52, %v382_v51 }
 0x130   : > { %v390_v56 = vmul.f32 %v387_v54, %v847_v1 }
 0x188   : > { %v393_v53 = vpop.permute.xlu0 %392 }
 0x189   : > { %v395_v55 = vmul.f32 %v393_v53, %v387_v54 }
 0x18b   : > { %397 = vrot.lane.b32.xlu1 %v395_v55, %s777_s22 }
 0x1fd   : > { %v398_v57 = vpop.permute.xlu1 %397 }
 0x1fe   : > { %v914_v58 = vadd.f32 %v398_v57, %v390_v56 }
 0x200   : > { %757 = vtanh.f32 %v914_v58 }
 0x206   : > { %v758_v59 = vpop.eup %757 }
 0x207   : > { %403 = vrot.lane.b32.xlu1 %v758_v59, %s777_s22 }
 0x20f   : > { %540 = vrot.lane.b32.xlu1 %v847_v1, %s778_s8  ;;  %v706_v1 = vld [vmem:[%s997_s2 + $0x20] sm:$0xf] }
 0x210   : > { %v707_v6 = vor.u32 %v739_v2, %v706_v1 }
 0x212   : > { %479 = vmatpush.bf16.msra.mxu2 %v707_v6 }
 0x216   : > { %480 = vmatpush.bf16.msra.mxu2 %v699_v12 }
 0x21a   : > { %481 = vmatpush.bf16.msra.mxu2 %v691_v18 }
 0x279   : > { %v404_v20 = vpop.permute.xlu1 %403 }
 0x27a   : > { %v406_v21 = vmul.f32 %v404_v20, %v387_v54 }
 0x27c   : > { %v407_v22 = vpack.c.bf16 %v406_v21, %v406_v21 }
 0x27e   : > { %v411_v23 = vunpack.c.l.b16 %v407_v22 }
 0x280   : > { %v412_v24 = vpack.c.b16 %v411_v23, %v411_v23 }
 0x281   : > { %v541_v53 = vpop.permute.xlu1 %540 }
 0x282   : > { %413 = vrot.lane.b32.xlu2 %v412_v24, %s779_s30 }
 0x2dc   : > { %v414_v26 = vpop.permute.xlu2 %413 }
 0x2dd   : > { %v417_v27 = vsel %vm287_vm0, %v409_v25, %v414_v26 }
 0x2de   : > { %720 = vmatmul.msk.bf16.vlgmr.msra.gmra.mxu2 %vm341_vm1, %v417_v27  ;;  %721 = vmatmul.msk.bf16.vlgmr.msra.gmra.mxu3 %vm341_vm1, %v417_v27 }
 0x361   : > { %v483_v31 = vpop.f32.mrf.mxu2  ;;  %v496_v32 = vpop.f32.mrf.mxu3 }
 0x362   : > { %v484_v33 = vadd.f32 %v483_v31, %v428_v29  ;;  %v497_v34 = vadd.f32 %v496_v32, %v429_v30 }
 0x364   : > { %v538_v35 = vmax.f32 %v484_v33, %v497_v34  ;;  %v722_v38 = vmul.f32 -1.442695, %v484_v33  ;;  %v723_v61 = vmul.f32 -1.442695, %v497_v34 }
 0x366   : > { %545 = vrot.lane.b32.xlu0 %v538_v35, %s777_s22  ;;  %759 = vpow2.f32 %v722_v38 }
 0x369   : > { %v485_v36 = vpop.f32.mrf.mxu2  ;;  %v498_v37 = vpop.f32.mrf.mxu3 }
 0x36c   : > { %v760_v39 = vpop.eup %759 }
 0x36d   : > { %v506_v40 = vadd.f32 1.0, %v760_v39 }
 0x36f   : > { %761 = vrcp.f32 %v506_v40  ;;  %v519_v46 = vand.u32 2147483648, %v506_v40  ;;  %vm513_vm7 = vweird.f32 %v506_v40  ;;  %v517_v47 = vand.u32 2147483647, %v506_v40 }
 0x371   : > { %v520_v49 = vor.u32 1.1754944e-38, %v519_v46  ;;  %vm518_vm9 = vcmp.eq.f32.partialorder %v517_v47, 8.507059e+37 }
 0x375   : > { %v762_v41 = vpop.eup %761 }
 0x376   : > { %v509_v42 = vmul.f32 %v762_v41, %v506_v40  ;;  %vm514_vm6 = vweird.f32 %v762_v41 }
 0x377   : > { %vm515_vm8 = vmor %vm513_vm7, %vm514_vm6 }
 0x378   : > { %v510_v43 = vsub.f32 1.0, %v509_v42 }
 0x37a   : > { %v511_v44 = vmul.f32 %v762_v41, %v510_v43 }
 0x37c   : > { %v512_v45 = vadd.f32 %v762_v41, %v511_v44 }
 0x37e   : > { %v516_v48 = vsel %vm515_vm8, %v762_v41, %v512_v45 }
 0x37f   : > { %v521_v50 = vsel %vm518_vm9, %v520_v49, %v516_v48 }
 0x380   : > { %v543_v54 = vmul.f32 %v541_v53, %v521_v50 }
 0x3d8   : > { %v546_v51 = vpop.permute.xlu0 %545 }
 0x3d9   : > { %v548_v52 = vmul.f32 %v546_v51, %v521_v50 }
 0x3db   : > { %550 = vrot.lane.b32.xlu2 %v548_v52, %s777_s22 }
 0x3e3   : > { %565 = vrot.lane.b32.xlu2 %v406_v21, %s777_s22 }
 0x435   : > { %v551_v55 = vpop.permute.xlu2 %550 }
 0x436   : > { %v553_v56 = vadd.f32 %v551_v55, %v543_v54 }
 0x438   : > { %763 = vtanh.f32 %v553_v56 }
 0x439   : > { %765 = vpow2.f32 %v723_v61 }
 0x43d   : > { %v566_v5 = vpop.permute.xlu2 %565 }
 0x43e   : > { %v764_v57 = vpop.eup %763 }
 0x43f   : > { %560 = vrot.lane.b32.xlu1 %v764_v57, %s778_s8  ;;  %556 = vrot.lane.b32.xlu0 %v764_v57, %s777_s22  ;;  %v766_v62 = vpop.eup %765 }
 0x440   : > { %v507_v63 = vadd.f32 1.0, %v766_v62 }
 0x442   : > { %767 = vrcp.f32 %v507_v63  ;;  %v534_v6 = vand.u32 2147483648, %v507_v63  ;;  %vm528_vm11 = vweird.f32 %v507_v63  ;;  %v532_v7 = vand.u32 2147483647, %v507_v63 }
 0x444   : > { %v535_v9 = vor.u32 1.1754944e-38, %v534_v6  ;;  %vm533_vm13 = vcmp.eq.f32.partialorder %v532_v7, 8.507059e+37 }
 0x447   : > { %573 = vrot.lane.b32.xlu1 %v553_v56, %s777_s22 }
 0x448   : > { %v768_v0 = vpop.eup %767 }
 0x449   : > { %v524_v1 = vmul.f32 %v768_v0, %v507_v63  ;;  %vm529_vm10 = vweird.f32 %v768_v0 }
 0x44a   : > { %vm530_vm12 = vmor %vm528_vm11, %vm529_vm10 }
 0x44b   : > { %v525_v2 = vsub.f32 1.0, %v524_v1 }
 0x44d   : > { %v526_v3 = vmul.f32 %v768_v0, %v525_v2 }
 0x44f   : > { %v527_v4 = vadd.f32 %v768_v0, %v526_v3 }
 0x451   : > { %v531_v8 = vsel %vm530_vm12, %v768_v0, %v527_v4 }
 0x452   : > { %v536_v11 = vsel %vm533_vm13, %v535_v9, %v531_v8 }
 0x4b1   : > { %v557_v59 = vpop.permute.xlu0 %556  ;;  %v561_v10 = vpop.permute.xlu1 %560 }
 0x4b2   : > { %v559_v60 = vmul.f32 %v557_v59, %v521_v50  ;;  %v563_v12 = vmul.f32 %v561_v10, %v536_v11 }
 0x4b4   : > { %581 = vrot.lane.b32.xlu2 %v559_v60, %s777_s22  ;;  %569 = vrot.lane.b32.xlu0 %v559_v60, %s779_s30 }
 0x4b9   : > { %v574_v17 = vpop.permute.xlu1 %573 }
 0x50e   : > { %v582_v13 = vpop.permute.xlu2 %581 }
 0x50f   : > { %v584_v14 = vsel %vm287_vm0, %v582_v13, %v563_v12 }
 0x510   : > { %585 = vst.msk [vmem:[%s836_s11] sm:$0xff] %vm341_vm1, %v584_v14 }
 0x526   : > { %v570_v15 = vpop.permute.xlu0 %569 }
 0x527   : > { %v576_v16 = vsel %vm287_vm0, %v566_v5, %v570_v15 }
 0x528   : > { %v577_v18 = vsel %vm341_vm1, %v576_v16, %v914_v58 }
 0x529   : > { %v579_v19 = vsel %vm578_vm14, %v577_v18, %v574_v17 }
 0x52a   : > { %580 = vst [vmem:[%s1002_s7] sm:$0xff] %v579_v19 }
 0x52b PF: > { %s18_s24 = sadd.s32 1, %s775_s24  }
 0x52c   : > { %p15_p5 = scmp.ge.s32.totalorder %s18_s24, 10  }
 0x52e   :  { %17 = sbr.rel (!%p15_p5) target bundleno = 1 (0x1), region = 86 }

</bundles_post_ra>
